<compile_context>
chip_gen: v7x
topology: tpu7x:2x2x1
jax: 0.10.0
libtpu: 0.0.40
codegen_flags: <defaults>
</compile_context>

<pallas_src>
import functools
import math

import jax
import jax.numpy as jnp
from jax import lax
from jax.experimental import pallas as pl
from jax.experimental.pallas import tpu as pltpu


# Finite stand-in for -inf: avoids (-inf) - (-inf) = nan in the online-softmax
# update when an entire score tile is masked out.
_NEG_INIT = -1e30


def _flash_attn_kernel(q_ref, k_ref, v_ref, m_ref, o_ref,
                       m_sc, l_sc, acc_sc, *, scale):
    """One (batch*head, q-tile, kv-tile) grid step.

    Ref shapes:
      q_ref : (tq, D)   query tile (bf16 by default)
      k_ref : (tk, D)   key tile
      v_ref : (tk, D)   value tile
      m_ref : (tq, tk)  additive mask tile (bf16 by default)
      o_ref : (tq, D)   output tile (written only at the last kv step)
      m_sc  : (tq, 1)   running row max        (f32 scratch)
      l_sc  : (tq, 1)   running softmax denom  (f32 scratch)
      acc_sc: (tq, D)   running output accum   (f32 scratch)
    """
    ki = pl.program_id(2)

    @pl.when(ki == 0)
    def _init():
        m_sc[...] = jnp.full_like(m_sc, _NEG_INIT)
        l_sc[...] = jnp.zeros_like(l_sc)
        acc_sc[...] = jnp.zeros_like(acc_sc)

    # Pre-scale the small Q tile (tq*D elements) instead of the (tq*tk) scores;
    # stays in the input (bf16) dtype so the MXU runs its fast path.
    q = q_ref[...] * scale

    # Scores: contract the last dims of Q and K directly (no explicit K^T /
    # XLU transpose); accumulate in f32 on the MXU.
    s = lax.dot_general(
        q, k_ref[...],
        dimension_numbers=(((1,), (1,)), ((), ())),
        preferred_element_type=jnp.float32,
    )
    s = s + m_ref[...].astype(jnp.float32)

    # Online softmax update.
    m_prev = m_sc[...]
    m_new = jnp.maximum(m_prev, jnp.max(s, axis=-1, keepdims=True))
    alpha = jnp.exp(m_prev - m_new)
    p = jnp.exp(s - m_new)
    l_sc[...] = alpha * l_sc[...] + jnp.sum(p, axis=-1, keepdims=True)
    acc_sc[...] = alpha * acc_sc[...] + jnp.dot(
        p.astype(v_ref.dtype), v_ref[...], preferred_element_type=jnp.float32)
    m_sc[...] = m_new

    @pl.when(ki == pl.num_programs(2) - 1)
    def _finalize():
        inv_l = pl.reciprocal(l_sc[...], approx=True)
        o_ref[...] = (acc_sc[...] * inv_l).astype(o_ref.dtype)


def _round_up(x, m):
    return (x + m - 1) // m * m


def _tiling(S, tq_pref, tk_pref):
    """Pick (tq, tk, S_pad) with tq | S_pad and tk | S_pad.

    Large S is padded up to a multiple of lcm(tq, tk) (keeps tile sizes
    bounded so VMEM stays small); short sequences use one full-extent tile,
    which always satisfies the (8,128)/full-dim tiling rule.
    """
    granule = math.lcm(tq_pref, tk_pref)
    if S >= granule:
        return tq_pref, tk_pref, _round_up(S, granule)
    return S, S, S


def attention(q, k, v, mask, *, tq=512, tk=1024, compute_dtype=jnp.bfloat16):
    """softmax(Q @ K^T / sqrt(D) + mask, axis=-1) @ V for (B, H, S, D) inputs."""
    B, H, S, D = q.shape
    assert k.shape == (B, H, S, D) and v.shape == (B, H, S, D)
    assert mask.shape == (B, H, S, S)

    out_dtype = q.dtype
    scale = 1.0 / math.sqrt(D)

    # bf16 operands for both MXU matmuls (f32 accumulation happens in-kernel
    # via preferred_element_type); also halves Q/K/V and — most importantly —
    # the dominant B*H*S^2 mask HBM stream.
    if compute_dtype is not None and q.dtype != compute_dtype:
        q = q.astype(compute_dtype)
        k = k.astype(compute_dtype)
        v = v.astype(compute_dtype)
        mask = mask.astype(compute_dtype)

    tq, tk, S_pad = _tiling(S, tq, tk)
    if S_pad != S:
        pad = S_pad - S
        # Zero-pad Q/K/V; pad mask key-columns with -inf so padded keys get
        # exactly zero softmax weight.  Padded query rows are sliced off below.
        q = jnp.pad(q, ((0, 0), (0, 0), (0, pad), (0, 0)))
        k = jnp.pad(k, ((0, 0), (0, 0), (0, pad), (0, 0)))
        v = jnp.pad(v, ((0, 0), (0, 0), (0, pad), (0, 0)))
        mask = jnp.pad(mask, ((0, 0), (0, 0), (0, pad), (0, pad)),
                       constant_values=-jnp.inf)

    # Flatten (B, H) into one parallel grid axis (amortizes per-step overhead
    # and lets Mosaic shard work across TensorCores).
    BH = B * H
    q3 = q.reshape(BH, S_pad, D)
    k3 = k.reshape(BH, S_pad, D)
    v3 = v.reshape(BH, S_pad, D)
    m3 = mask.reshape(BH, S_pad, S_pad)

    grid = (BH, S_pad // tq, S_pad // tk)
    kernel = functools.partial(_flash_attn_kernel, scale=scale)

    out = pl.pallas_call(
        kernel,
        out_shape=jax.ShapeDtypeStruct((BH, S_pad, D), out_dtype),
        grid_spec=pltpu.PrefetchScalarGridSpec(
            num_scalar_prefetch=0,
            grid=grid,
            in_specs=[
                pl.BlockSpec((None, tq, D), lambda bh, qi, ki: (bh, qi, 0)),
                pl.BlockSpec((None, tk, D), lambda bh, qi, ki: (bh, ki, 0)),
                pl.BlockSpec((None, tk, D), lambda bh, qi, ki: (bh, ki, 0)),
                pl.BlockSpec((None, tq, tk), lambda bh, qi, ki: (bh, qi, ki)),
            ],
            out_specs=pl.BlockSpec((None, tq, D), lambda bh, qi, ki: (bh, qi, 0)),
            scratch_shapes=[
                pltpu.VMEM((tq, 1), jnp.float32),   # running max
                pltpu.VMEM((tq, 1), jnp.float32),   # running denom
                pltpu.VMEM((tq, D), jnp.float32),   # output accumulator
            ],
        ),
        compiler_params=pltpu.CompilerParams(
            dimension_semantics=("parallel", "parallel", "arbitrary"),
        ),
    )(q3, k3, v3, m3)

    out = out.reshape(B, H, S_pad, D)
    if S_pad != S:
        out = out[:, :, :S, :]
    return out


def _reference(q, k, v, mask):
    s = jnp.einsum("bhqd,bhkd->bhqk", q, k) / math.sqrt(q.shape[-1]) + mask
    w = jax.nn.softmax(s, axis=-1)
    return jnp.einsum("bhqk,bhkd->bhqd", w, v)


if __name__ == "__main__":
    B, H, S, D = 2, 4, 8, 32
    key = jax.random.PRNGKey(0)
    kq, kk, kv, km = jax.random.split(key, 4)
    Q4 = jax.random.normal(kq, (B, H, S, D), dtype=jnp.float32)
    k5 = jax.random.normal(kk, (B, H, S, D), dtype=jnp.float32)
    V1 = jax.random.normal(kv, (B, H, S, D), dtype=jnp.float32)
    m3 = jax.random.normal(km, (B, H, S, S), dtype=jnp.float32)

    out = attention(Q4, k5, V1, m3)
    jax.block_until_ready(out)

    ref = _reference(Q4, k5, V1, m3)
    assert out.shape == (B, H, S, D)
    assert out.dtype == Q4.dtype
    # Tolerance sized for bf16 MXU operands (Q/K/V, mask, probs) and the EUP
    # approximate reciprocal, versus the exact-f32 reference.
    err = float(jnp.max(jnp.abs(out - ref)))
    assert jnp.allclose(out, ref, atol=5e-2, rtol=5e-2), err

    print("KERNEL_OK")
</pallas_src>

<mosaic_0001>
module attributes {stable_mosaic.version = 11 : i64} {
  func.func @_flash_attn_kernel(%arg0: i32, %arg1: i32, %arg2: i32, %arg3: memref<1x8x32xbf16, #tpu.memory_space<vmem>>, %arg4: memref<1x8x32xbf16, #tpu.memory_space<vmem>>, %arg5: memref<1x8x32xbf16, #tpu.memory_space<vmem>>, %arg6: memref<1x8x8xbf16, #tpu.memory_space<vmem>>, %arg7: memref<1x8x32xf32, #tpu.memory_space<vmem>>, %arg8: memref<8x1xf32, #tpu.memory_space<vmem>>, %arg9: memref<8x1xf32, #tpu.memory_space<vmem>>, %arg10: memref<8x32xf32, #tpu.memory_space<vmem>>) attributes {dimension_semantics = [#tpu.dimension_semantics<parallel>, #tpu.dimension_semantics<parallel>, #tpu.dimension_semantics<arbitrary>], iteration_bounds = array<i64: 8, 1, 1>, scalar_prefetch = 0 : i64, scratch_operands = 3 : i64, tpu.core_type = #tpu.core_type<tc>, window_params = [{transform_indices = @transform_0, window_bounds = array<i64: 1, 8, 32>}, {transform_indices = @transform_1, window_bounds = array<i64: 1, 8, 32>}, {transform_indices = @transform_2, window_bounds = array<i64: 1, 8, 32>}, {transform_indices = @transform_3, window_bounds = array<i64: 1, 8, 8>}, {transform_indices = @transform_4, window_bounds = array<i64: 1, 8, 32>}]} {
    %c0_i32 = arith.constant 0 : i32
    %0 = arith.cmpi eq, %arg2, %c0_i32 : i32
    %1 = arith.extui %0 : i1 to i32
    %c0_i32_0 = arith.constant 0 : i32
    %2 = arith.cmpi ne, %1, %c0_i32_0 : i32
    scf.if %2 {
      %cst_30 = arith.constant -1.000000e+30 : f32
      %42 = vector.broadcast %cst_30 : f32 to vector<8x1xf32>
      %c0_31 = arith.constant 0 : index
      %c0_32 = arith.constant 0 : index
      %43 = vector.load %arg8[%c0_31, %c0_32] : memref<8x1xf32, #tpu.memory_space<vmem>>, vector<8x1xf32>
      tpu.vector_store %arg8[%c0_31, %c0_32], %42 {strides = array<i32>} : memref<8x1xf32, #tpu.memory_space<vmem>>, vector<8x1xf32>,
      %cst_33 = arith.constant 0.000000e+00 : f32
      %44 = vector.broadcast %cst_33 : f32 to vector<8x1xf32>
      %c0_34 = arith.constant 0 : index
      %c0_35 = arith.constant 0 : index
      %45 = vector.load %arg9[%c0_34, %c0_35] : memref<8x1xf32, #tpu.memory_space<vmem>>, vector<8x1xf32>
      tpu.vector_store %arg9[%c0_34, %c0_35], %44 {strides = array<i32>} : memref<8x1xf32, #tpu.memory_space<vmem>>, vector<8x1xf32>,
      %cst_36 = arith.constant 0.000000e+00 : f32
      %46 = vector.broadcast %cst_36 : f32 to vector<8x32xf32>
      %c0_37 = arith.constant 0 : index
      %c0_38 = arith.constant 0 : index
      %47 = vector.load %arg10[%c0_37, %c0_38] : memref<8x32xf32, #tpu.memory_space<vmem>>, vector<8x32xf32>
      tpu.vector_store %arg10[%c0_37, %c0_38], %46 {strides = array<i32>} : memref<8x32xf32, #tpu.memory_space<vmem>>, vector<8x32xf32>,
    } else {
    }
    %c0 = arith.constant 0 : index
    %c0_1 = arith.constant 0 : index
    %c0_2 = arith.constant 0 : index
    %3 = vector.load %arg3[%c0, %c0_1, %c0_2] : memref<1x8x32xbf16, #tpu.memory_space<vmem>>, vector<1x8x32xbf16>
    %4 = vector.shape_cast %3 : vector<1x8x32xbf16> to vector<8x32xbf16>
    %cst = arith.constant 1.767580e-01 : bf16
    %5 = vector.broadcast %cst : bf16 to vector<8x32xbf16>
    %6 = arith.mulf %4, %5 : vector<8x32xbf16>
    %c0_3 = arith.constant 0 : index
    %c0_4 = arith.constant 0 : index
    %c0_5 = arith.constant 0 : index
    %7 = vector.load %arg4[%c0_3, %c0_4, %c0_5] : memref<1x8x32xbf16, #tpu.memory_space<vmem>>, vector<1x8x32xbf16>
    %8 = vector.shape_cast %7 : vector<1x8x32xbf16> to vector<8x32xbf16>
    %cst_6 = arith.constant dense<0.000000e+00> : vector<8x8xf32>
    %9 = tpu.matmul %6, %8, %cst_6 {dimension_numbers = #tpu.dot_dimension_numbers<[1], [1], [0], [0], [0, 0, 1, 0], [], []>} : vector<8x32xbf16>, vector<8x32xbf16>, vector<8x8xf32> -> vector<8x8xf32>
    %c0_7 = arith.constant 0 : index
    %c0_8 = arith.constant 0 : index
    %c0_9 = arith.constant 0 : index
    %10 = vector.load %arg6[%c0_7, %c0_8, %c0_9] : memref<1x8x8xbf16, #tpu.memory_space<vmem>>, vector<1x8x8xbf16>
    %11 = vector.shape_cast %10 : vector<1x8x8xbf16> to vector<8x8xbf16>
    %12 = arith.extf %11 : vector<8x8xbf16> to vector<8x8xf32>
    %13 = arith.addf %9, %12 : vector<8x8xf32>
    %c0_10 = arith.constant 0 : index
    %c0_11 = arith.constant 0 : index
    %14 = vector.load %arg8[%c0_10, %c0_11] : memref<8x1xf32, #tpu.memory_space<vmem>>, vector<8x1xf32>
    %cst_12 = arith.constant dense<0xFF800000> : vector<8xf32>
    %15 = vector.multi_reduction <maximumf>, %13, %cst_12 [1] : vector<8x8xf32> to vector<8xf32>
    %16 = vector.shape_cast %15 : vector<8xf32> to vector<8x1xf32>
    %17 = arith.maximumf %14, %16 : vector<8x1xf32>
    %18 = arith.subf %14, %17 : vector<8x1xf32>
    %19 = math.exp %18 : vector<8x1xf32>
    %20 = vector.broadcast %17 : vector<8x1xf32> to vector<8x8xf32>
    %21 = arith.subf %13, %20 : vector<8x8xf32>
    %22 = math.exp %21 : vector<8x8xf32>
    %c0_13 = arith.constant 0 : index
    %c0_14 = arith.constant 0 : index
    %23 = vector.load %arg9[%c0_13, %c0_14] : memref<8x1xf32, #tpu.memory_space<vmem>>, vector<8x1xf32>
    %24 = arith.mulf %19, %23 : vector<8x1xf32>
    %cst_15 = arith.constant dense<0.000000e+00> : vector<8xf32>
    %25 = vector.multi_reduction <add>, %22, %cst_15 [1] : vector<8x8xf32> to vector<8xf32>
    %26 = vector.shape_cast %25 : vector<8xf32> to vector<8x1xf32>
    %27 = arith.addf %24, %26 : vector<8x1xf32>
    %c0_16 = arith.constant 0 : index
    %c0_17 = arith.constant 0 : index
    %28 = vector.load %arg9[%c0_16, %c0_17] : memref<8x1xf32, #tpu.memory_space<vmem>>, vector<8x1xf32>
    tpu.vector_store %arg9[%c0_16, %c0_17], %27 {strides = array<i32>} : memref<8x1xf32, #tpu.memory_space<vmem>>, vector<8x1xf32>,
    %c0_18 = arith.constant 0 : index
    %c0_19 = arith.constant 0 : index
    %29 = vector.load %arg10[%c0_18, %c0_19] : memref<8x32xf32, #tpu.memory_space<vmem>>, vector<8x32xf32>
    %30 = vector.broadcast %19 : vector<8x1xf32> to vector<8x32xf32>
    %31 = arith.mulf %30, %29 : vector<8x32xf32>
    %32 = arith.truncf %22 : vector<8x8xf32> to vector<8x8xbf16>
    %c0_20 = arith.constant 0 : index
    %c0_21 = arith.constant 0 : index
    %c0_22 = arith.constant 0 : index
    %33 = vector.load %arg5[%c0_20, %c0_21, %c0_22] : memref<1x8x32xbf16, #tpu.memory_space<vmem>>, vector<1x8x32xbf16>
    %34 = vector.shape_cast %33 : vector<1x8x32xbf16> to vector<8x32xbf16>
    %cst_23 = arith.constant dense<0.000000e+00> : vector<8x32xf32>
    %35 = tpu.matmul %32, %34, %cst_23 {dimension_numbers = #tpu.dot_dimension_numbers<[1], [0], [0], [1], [0, 0, 1, 1], [], []>} : vector<8x8xbf16>, vector<8x32xbf16>, vector<8x32xf32> -> vector<8x32xf32>
    %36 = arith.addf %31, %35 : vector<8x32xf32>
    %c0_24 = arith.constant 0 : index
    %c0_25 = arith.constant 0 : index
    %37 = vector.load %arg10[%c0_24, %c0_25] : memref<8x32xf32, #tpu.memory_space<vmem>>, vector<8x32xf32>
    tpu.vector_store %arg10[%c0_24, %c0_25], %36 {strides = array<i32>} : memref<8x32xf32, #tpu.memory_space<vmem>>, vector<8x32xf32>,
    %c0_26 = arith.constant 0 : index
    %c0_27 = arith.constant 0 : index
    %38 = vector.load %arg8[%c0_26, %c0_27] : memref<8x1xf32, #tpu.memory_space<vmem>>, vector<8x1xf32>
    tpu.vector_store %arg8[%c0_26, %c0_27], %17 {strides = array<i32>} : memref<8x1xf32, #tpu.memory_space<vmem>>, vector<8x1xf32>,
    %c0_i32_28 = arith.constant 0 : i32
    %39 = arith.cmpi eq, %arg2, %c0_i32_28 : i32
    %40 = arith.extui %39 : i1 to i32
    %c0_i32_29 = arith.constant 0 : i32
    %41 = arith.cmpi ne, %40, %c0_i32_29 : i32
    scf.if %41 {
      %c0_30 = arith.constant 0 : index
      %c0_31 = arith.constant 0 : index
      %42 = vector.load %arg9[%c0_30, %c0_31] : memref<8x1xf32, #tpu.memory_space<vmem>>, vector<8x1xf32>
      %43 = tpu.reciprocal %42 {approx = true} : vector<8x1xf32> -> vector<8x1xf32>
      %c0_32 = arith.constant 0 : index
      %c0_33 = arith.constant 0 : index
      %44 = vector.load %arg10[%c0_32, %c0_33] : memref<8x32xf32, #tpu.memory_space<vmem>>, vector<8x32xf32>
      %45 = vector.broadcast %43 : vector<8x1xf32> to vector<8x32xf32>
      %46 = arith.mulf %44, %45 : vector<8x32xf32>
      %c0_34 = arith.constant 0 : index
      %c0_35 = arith.constant 0 : index
      %c0_36 = arith.constant 0 : index
      %47 = vector.load %arg7[%c0_34, %c0_35, %c0_36] : memref<1x8x32xf32, #tpu.memory_space<vmem>>, vector<1x8x32xf32>
      %48 = vector.shape_cast %47 : vector<1x8x32xf32> to vector<8x32xf32>
      %49 = vector.shape_cast %46 : vector<8x32xf32> to vector<1x8x32xf32>
      tpu.vector_store %arg7[%c0_34, %c0_35, %c0_36], %49 {strides = array<i32>} : memref<1x8x32xf32, #tpu.memory_space<vmem>>, vector<1x8x32xf32>,
    } else {
    }
    return
  }
  func.func @transform_0(%arg0: i32, %arg1: i32, %arg2: i32) -> (i32, i32, i32) {
    %c0_i32 = arith.constant 0 : i32
    %c0_i32_0 = arith.constant 0 : i32
    return %arg0, %arg1, %c0_i32 : i32, i32, i32
  }
  func.func @transform_1(%arg0: i32, %arg1: i32, %arg2: i32) -> (i32, i32, i32) {
    %c0_i32 = arith.constant 0 : i32
    %c0_i32_0 = arith.constant 0 : i32
    return %arg0, %arg2, %c0_i32 : i32, i32, i32
  }
  func.func @transform_2(%arg0: i32, %arg1: i32, %arg2: i32) -> (i32, i32, i32) {
    %c0_i32 = arith.constant 0 : i32
    %c0_i32_0 = arith.constant 0 : i32
    return %arg0, %arg2, %c0_i32 : i32, i32, i32
  }
  func.func @transform_3(%arg0: i32, %arg1: i32, %arg2: i32) -> (i32, i32, i32) {
    %c0_i32 = arith.constant 0 : i32
    return %arg0, %arg1, %arg2 : i32, i32, i32
  }
  func.func @transform_4(%arg0: i32, %arg1: i32, %arg2: i32) -> (i32, i32, i32) {
    %c0_i32 = arith.constant 0 : i32
    %c0_i32_0 = arith.constant 0 : i32
    return %arg0, %arg1, %c0_i32 : i32, i32, i32
  }
}

</mosaic_0001>

<bundles_post_ra>
// kernel: tpu_custom_call.1
= control target key start
LH: loop header
LB: loop body
LE: loop exit
PB: predicated region body
PF: predicated region fallthrough
CT: control target
= control target key end

     0   :  { %s1367_s0 = inlined_call_operand.hbm [shape: bf16[8,8,32], index: 0, kind: input, shape index: {}]   ;;  %s1368_s1 = inlined_call_operand.hbm [shape: bf16[8,8,32], index: 1, kind: input, shape index: {}]   ;;  %s1369_s2 = inlined_call_operand.hbm [shape: bf16[8,8,32], index: 2, kind: input, shape index: {}]   ;;  %s1370_s3 = inlined_call_operand.hbm [shape: bf16[8,8,8], index: 3, kind: input, shape index: {}]   ;;  %s1371_s4 = inlined_call_operand.hbm [shape: f32[8,8,32], index: 4, kind: output, shape index: {}]  }
   0x1   :  { %1380 = sst [smem:[#allocation23_spill]] %s1368_s1 }
   0x2   :  { %9 = vsyncpa [#allocation6], 0 }
   0x3   :  { %11 = vsyncpa [#allocation6 + $0x1], 0 }
   0x4   :  { %12 = vsyncpa [#allocation9], 0 }
   0x5   :  { %14 = vsyncpa [#allocation9 + $0x1], 0 }
   0x6   :  { %15 = vsyncpa [#allocation12], 0 }
   0x7   :  { %17 = vsyncpa [#allocation12 + $0x1], 0 }
   0x8   :  { %18 = vsyncpa [#allocation7], 0 }
   0x9   :  { %20 = vsyncpa [#allocation7 + $0x1], 0  ;;  %s1060_s15 = smov 0   ;;  %s1062_s16 = smov 0  }
   0xa   :  { %s1064_s17 = smov 0   ;;  %s1066_s18 = smov 0  }
   0xb   :  { %s1068_s19 = smov 0   ;;  %s1070_s20 = smov 0  }
   0xc LB: > { %1381 = sst [smem:[#allocation18_spill]] %s1012_s17  ;;  %s1091_s21 = sadd.s32 4294967295, %s1024_s20   ;;  %s1024_s20 = sphi %s1070_s20, %s26_s20   ;;  %s1020_s19 = sphi %s1068_s19, %s1406_s19   ;;  %s1016_s18 = sphi %s1066_s18, %s1405_s18   ;;  %s1012_s17 = sphi %s1064_s17, %s1404_s17   ;;  %s1008_s16 = sphi %s1062_s16, %s1408_s16   ;;  %s1004_s15 = sphi %s1060_s15, %s1407_s15  }
   0xd   : > { %1382 = sst [smem:[#allocation19_spill]] %s1020_s19  ;;  %s686_s22 = sadd.s32 4294967294, %s1024_s20  }
   0xe   : > { %s45_s23 = sadd.s32 1, %s1020_s19  ;;  %s54_s24 = sadd.s32 1, %s1012_s17 }
   0xf   : > { %p47_p0 = scmp.ge.s32.totalorder %s45_s23, 8  ;;  %p61_p1 = scmp.ne.s32.totalorder %s1012_s17, %s1008_s16 }
  0x10   : > { %p62_p2 = scmp.eq.s32.totalorder %s1024_s20, 0  ;;  %p67_p3 = scmp.ne.s32.totalorder %s1008_s16, %s1004_s15 }
  0x11   : > { %s1410_s23 = smov (%p47_p0, %s45_s23), 0  ;;  %p68_p5 = scmp.eq.s32.totalorder %s1091_s21, 0 }
  0x12   : > { %1383 = sst [smem:[#allocation20_spill]] %s1410_s23  ;;  %p1103_p4 = por %p62_p2, %p61_p1 }
  0x13   : > { %s49_s26 = ssub.s32 %s1020_s19, %s1410_s23  ;;  %p179_p6 = scmp.eq.s32.totalorder %s1091_s21, 7 }
  0x14   : > { %p52_p7 = scmp.eq.s32.totalorder %s49_s26, 0  ;;  %p1111_p8 = por %p68_p5, %p67_p3 }
  0x15   : > { %p1115_p9 = por %p179_p6, %p61_p1  ;;  %p185_p10 = scmp.eq.s32.totalorder %s686_s22, 7 }
  0x16   : > { %s1385_s27 = scalar_select %p1111_p8, 1, 0 }
  0x17   : > { %s1386_s28 = scalar_select %p1115_p9, 1, 0 }
  0x18   : > { %s1120_s29 = scalar_select %p52_p7, %s1012_s17, %s54_s24  }
  0x19   : > { %p1122_p11 = por %p185_p10, %p67_p3  ;;  %p752_p12 = scmp.lt.s32.totalorder %s1024_s20, 8 }
  0x1a   : > { %1387 = sst [smem:[#allocation21_spill]] %s1120_s29  ;;  %s1128_s5 = sand.u32 1, %s1012_s17  }
  0x1b   : > { %s1388_s30 = scalar_select %p1122_p11, 1, 0 }
  0x1c   : > { %s1131_s6 = sshll.u32 %s1128_s5, 2  ;;  %s1134_s7 = sshll.u32 %s1020_s19, 6 }
  0x1d   : > { %1389 = sst [smem:[#allocation22_spill]] %s1388_s30  ;;  %p1138_p13 = pnand %p752_p12, %p1103_p4 }
  0x1e   : > { %s224_s9 = sand.u32 1, %s1024_s20   ;;  %s1391_s1 = sld [smem:[#allocation23_spill]] }
  0x1f   : > { %s1390_s8 = scalar_select %p1138_p13, 1, 0 }
  0x20   : > { %s228_s13 = scalar_lea.vmem [#allocation8], %s1131_s6  ;;  %s1154_s22 = scalar_lea.sflag [#allocation9], %s224_s9 }
  0x21   : > { %s236_s14 = sshll.u32 %s228_s13, 4  ;;  %p1160_p3 = pneg %p1138_p13  ;;  %s1151_s14 = int_to_ptr.vmem [resolvable:$true] %s236_s14 }
  0x24   : > { %s1147_s12 = scalar_lea.hbm %s1391_s1, %s1134_s7  ;;  %s819_s11 = scalar_lea.hbm %s1391_s1, 512 }
  0x25   : > { %s814_s24 = scalar_lea.hbm %s1147_s12, 64  ;;  %p820_p6 = scmp.lt.u32.totalorder %s1147_s12, %s1391_s1 }
  0x26   : > { %p815_p2 = scmp.ne.s32.totalorder %s1147_s12, %s814_s24  ;;  %p821_p7 = scmp.lt.u32.totalorder %s819_s11, %s814_s24 }
  0x27   : > { %p823_p12 = scmp.lt.u32.totalorder %s814_s24, %s1147_s12 }
  0x28   : > { %p817_p4 = pnand %p1160_p3, %p815_p2  ;;  %p822_p10 = por %p821_p7, %p820_p6 }
  0x2a   : > { %p818_p5 = pneg %p817_p4  ;;  %p824_p0 = por %p823_p12, %p822_p10 }
  0x2c   : > { %p825_p1 = pnand %p824_p0, %p818_p5 }
  0x2e   : > { %828 = shalt.err (!%p825_p1)
}
  0x2f   : > { %s829_s9 = scalar_lea.vmem %s1151_s14, 64  ;;  %s1026_s26 = smov [#allocation8]  }
  0x30   : > { %p830_p2 = scmp.ne.s32.totalorder %s1151_s14, %s829_s9  ;;  %s834_s10 = sshll.u32 %s1026_s26, 4  ;;  %s835_s10 = int_to_ptr.vmem [resolvable:$false] %s834_s10 }
  0x31   : > { %s836_s23 = scalar_lea.vmem %s835_s10, 128  ;;  %p837_p9 = scmp.lt.s32.totalorder %s1151_s14, %s835_s10 }
  0x32   : > { %p832_p4 = pnand %p830_p2, %p1160_p3  ;;  %p838_p8 = scmp.lt.s32.totalorder %s836_s23, %s829_s9 }
  0x34   : > { %p833_p11 = pneg %p832_p4  ;;  %p839_p6 = por %p838_p8, %p837_p9 }
  0x36   : > { %p840_p7 = pnand %p839_p6, %p833_p11 }
  0x38   : > { %843 = shalt.err (!%p840_p7)
}
  0x39   : > { %741 = dma.hbm_to_vmem [thread:$0]  (!%p1138_p13), %s1147_s12, 64, %s1151_s14, %s1154_s22  }
  0x3a   : > { %p1393_p0 = scmp.lt.s32.totalorder %s1024_s20, 9  ;;  %p1394_p1 = scmp.ge.s32.totalorder %s1024_s20, 1 }
  0x3b   : > { %s1196_s9 = scalar_lea.hbm %s1367_s0, %s1134_s7  ;;  %s209_s26 = scalar_lea.vmem [#allocation5], %s1131_s6 }
  0x3c   : > { %p1188_p5 = pnand %p1394_p1, %p1393_p0  ;;  %s217_s10 = sshll.u32 %s209_s26, 4  ;;  %s1199_s10 = int_to_ptr.vmem [resolvable:$true] %s217_s10 }
  0x3d   : > { %s1205_s23 = scalar_lea.hbm %s1369_s2, %s1134_s7  ;;  %s206_s1 = scalar_lea.sflag [#allocation6], %s1128_s5 }
  0x3e   : > { %s1395_s24 = scalar_select %p1188_p5, 1, 0 }
  0x3f   : > { %s844_s19 = scalar_lea.hbm %s1196_s9, 64  ;;  %s849_s29 = scalar_lea.hbm %s1367_s0, 512 }
  0x40   : > { %p845_p8 = scmp.ne.s32.totalorder %s1196_s9, %s844_s19  ;;  %p850_p10 = scmp.lt.u32.totalorder %s1196_s9, %s1367_s0 }
  0x41   : > { %p851_p12 = scmp.lt.u32.totalorder %s849_s29, %s844_s19  ;;  %p853_p4 = scmp.lt.u32.totalorder %s844_s19, %s1196_s9 }
  0x42   : > { %p847_p9 = pnand %p845_p8, %p1160_p3 }
  0x43   : > { %p852_p2 = por %p851_p12, %p850_p10 }
  0x44   : > { %p848_p11 = pneg %p847_p9 }
  0x45   : > { %p854_p6 = por %p853_p4, %p852_p2 }
  0x47   : > { %p855_p7 = pnand %p854_p6, %p848_p11 }
  0x49   : > { %858 = shalt.err (!%p855_p7)
}
  0x4a   : > { %s859_s26 = scalar_lea.vmem %s1199_s10, 64  ;;  %s1027_s12 = smov [#allocation5]  }
  0x4b   : > { %p860_p0 = scmp.ne.s32.totalorder %s1199_s10, %s859_s26  ;;  %s864_s14 = sshll.u32 %s1027_s12, 4  ;;  %s865_s14 = int_to_ptr.vmem [resolvable:$false] %s864_s14 }
  0x4c   : > { %s866_s17 = scalar_lea.vmem %s865_s14, 128  ;;  %p867_p9 = scmp.lt.s32.totalorder %s1199_s10, %s865_s14 }
  0x4d   : > { %p862_p1 = pnand %p860_p0, %p1160_p3  ;;  %p868_p5 = scmp.lt.s32.totalorder %s866_s17, %s859_s26 }
  0x4f   : > { %p863_p8 = pneg %p862_p1  ;;  %p869_p10 = por %p868_p5, %p867_p9 }
  0x51   : > { %p870_p12 = pnand %p869_p10, %p863_p8 }
  0x53   : > { %873 = shalt.err (!%p870_p12)
}
  0x54   : > { %738 = dma.hbm_to_vmem [thread:$0]  (!%p1138_p13), %s1196_s9, 64, %s1199_s10, %s206_s1  }
  0x55   : > { %s247_s19 = scalar_lea.vmem [#allocation10], %s1131_s6  ;;  %s874_s30 = scalar_lea.hbm %s1205_s23, 64 }
  0x56   : > { %s255_s29 = sshll.u32 %s247_s19, 4  ;;  %p875_p11 = scmp.ne.s32.totalorder %s1205_s23, %s874_s30  ;;  %s256_s29 = int_to_ptr.vmem [resolvable:$true] %s255_s29 }
  0x57   : > { %s879_s26 = scalar_lea.hbm %s1369_s2, 512  ;;  %p880_p4 = scmp.lt.u32.totalorder %s1205_s23, %s1369_s2 }
  0x58   : > { %p877_p5 = pnand %p875_p11, %p1160_p3  ;;  %p881_p6 = scmp.lt.u32.totalorder %s879_s26, %s874_s30 }
  0x59   : > { %p883_p0 = scmp.lt.u32.totalorder %s874_s30, %s1205_s23 }
  0x5a   : > { %p878_p2 = pneg %p877_p5  ;;  %p882_p7 = por %p881_p6, %p880_p4 }
  0x5c   : > { %p884_p1 = por %p883_p0, %p882_p7 }
  0x5e   : > { %p885_p8 = pnand %p884_p1, %p878_p2 }
  0x60   : > { %888 = shalt.err (!%p885_p8)
}
  0x61   : > { %s889_s1 = scalar_lea.vmem %s256_s29, 64  ;;  %s1028_s9 = smov [#allocation10]  }
  0x62   : > { %p890_p9 = scmp.ne.s32.totalorder %s256_s29, %s889_s1  ;;  %s894_s10 = sshll.u32 %s1028_s9, 4  ;;  %s895_s10 = int_to_ptr.vmem [resolvable:$false] %s894_s10 }
  0x63   : > { %s896_s17 = scalar_lea.vmem %s895_s10, 128  ;;  %p897_p11 = scmp.lt.s32.totalorder %s256_s29, %s895_s10 }
  0x64   : > { %p892_p10 = pnand %p890_p9, %p1160_p3  ;;  %p898_p5 = scmp.lt.s32.totalorder %s896_s17, %s889_s1 }
  0x66   : > { %p893_p12 = pneg %p892_p10  ;;  %p899_p13 = por %p898_p5, %p897_p11 }
  0x68   : > { %p900_p4 = pnand %p899_p13, %p893_p12 }
  0x6a   : > { %903 = shalt.err (!%p900_p4)
}
  0x6b   : > { %p1396_p6 = scmp.ne.s32.totalorder %s1390_s8, 0  ;;  %s1252_s11 = scalar_lea.hbm %s1370_s3, %s1134_s7 }
  0x6c   : > { %s266_s13 = scalar_lea.vmem [#allocation11], %s1131_s6  ;;  %s263_s12 = scalar_lea.sflag [#allocation12], %s1128_s5 }
  0x6d   : > { %744 = dma.hbm_to_vmem [thread:$0]  (!%p1396_p6), %s1205_s23, 64, %s256_s29, %s1154_s22  }
  0x6e   : > { %s275_s26 = sshll.u32 %s266_s13, 4  ;;  %s904_s14 = scalar_lea.hbm %s1252_s11, 64  ;;  %s276_s26 = int_to_ptr.vmem [resolvable:$true] %s275_s26 }
  0x6f   : > { %p905_p13 = scmp.ne.s32.totalorder %s1252_s11, %s904_s14  ;;  %s909_s23 = scalar_lea.hbm %s1370_s3, 512 }
  0x70   : > { %p910_p0 = scmp.lt.u32.totalorder %s1252_s11, %s1370_s3  ;;  %p911_p1 = scmp.lt.u32.totalorder %s909_s23, %s904_s14 }
  0x71   : > { %p907_p2 = pnand %p905_p13, %p1160_p3  ;;  %p913_p9 = scmp.lt.u32.totalorder %s904_s14, %s1252_s11 }
  0x72   : > { %p912_p8 = por %p911_p1, %p910_p0 }
  0x73   : > { %p908_p7 = pneg %p907_p2 }
  0x74   : > { %p914_p10 = por %p913_p9, %p912_p8 }
  0x76   : > { %p915_p12 = pnand %p914_p10, %p908_p7 }
  0x78   : > { %918 = shalt.err (!%p915_p12)
}
  0x79   : > { %s919_s5 = scalar_lea.vmem %s276_s26, 64  ;;  %s1029_s6 = smov [#allocation11]  }
  0x7a   : > { %p920_p11 = scmp.ne.s32.totalorder %s276_s26, %s919_s5  ;;  %s924_s9 = sshll.u32 %s1029_s6, 4  ;;  %s925_s9 = int_to_ptr.vmem [resolvable:$false] %s924_s9 }
  0x7b   : > { %s926_s10 = scalar_lea.vmem %s925_s9, 128  ;;  %p927_p13 = scmp.lt.s32.totalorder %s276_s26, %s925_s9 }
  0x7c   : > { %p922_p5 = pnand %p920_p11, %p1160_p3  ;;  %p928_p2 = scmp.lt.s32.totalorder %s926_s10, %s919_s5 }
  0x7e   : > { %p923_p4 = pneg %p922_p5  ;;  %p929_p6 = por %p928_p2, %p927_p13 }
  0x80   : > { %p930_p0 = pnand %p929_p6, %p923_p4 }
  0x82   : > { %933 = shalt.err (!%p930_p0)
}
  0x83   : > { %p1397_p1 = scmp.ne.s32.totalorder %s1390_s8, 0  ;;  %p1398_p7 = scmp.ne.s32.totalorder %s1395_s24, 0 }
  0x84   : > { %s1276_s25 = sand.u32 (!%p1398_p7), 1, %s1008_s16   ;;  %p1399_p3 = scmp.ne.s32.totalorder (!%p1398_p7), %s1385_s27, 0 }
  0x85   : > { %747 = dma.hbm_to_vmem [thread:$0]  (!%p1397_p1), %s1252_s11, 64, %s276_s26, %s263_s12  }
  0x86   : > { %284 = sbr.rel (%p1398_p7) target bundleno = 968 (0x3c8), region = 36  ;;  %s1279_s17 = sshll.u32 (!%p1398_p7), %s1276_s25, 2 }
  0x87   : > { %s287_s19 = scalar_lea.sflag (!%p1398_p7), [#allocation6], %s1276_s25  ;;  %s290_s30 = scalar_lea.vmem (!%p1398_p7), [#allocation5], %s1279_s17 }
  0x8d   : > { %987 = dma.done.wait (%p1399_p3), %s287_s19, 64  }
  0x8e   : > { %989 = vsyncadd (%p1399_p3), %s287_s19, 4294967232  ;;  %s295_s8 = sand.u32 1, %s1091_s21   ;;  %s299_s11 = scalar_lea.vmem [#allocation8], %s1279_s17 }
  0x8f   : > { %s296_s24 = scalar_lea.sflag [#allocation9], %s295_s8 }
  0x90   : > { %991 = dma.done.wait (%p1399_p3), %s296_s24, 128  }
  0x91   : > { %993 = vsyncadd (%p1399_p3), %s296_s24, 4294967168  ;;  %s308_s13 = scalar_lea.vmem [#allocation10], %s1279_s17  ;;  %s314_s26 = scalar_lea.sflag [#allocation12], %s1276_s25 }
  0x92   : > { %s317_s12 = scalar_lea.vmem [#allocation11], %s1279_s17 }
  0x93   : > { %995 = dma.done.wait (%p1399_p3), %s314_s26, 64  }
  0x94   : > { %997 = vsyncadd (%p1399_p3), %s314_s26, 4294967232  ;;  %vm366_vm0 = vcmask 261120   ;;  %v1030_v0 = vmov 0.0   ;;  %vm1031_vm1 = vmmov 0   ;;  %v370_v1 = vld [vmem:[%s299_s11] sm:$0xf] }
  0x95   : > { %713 = vmatprep.subr.bf16.mxu0 %v1030_v0  ;;  %367 = vst.msk [vmem:[#allocation4] sm:$0xff] %vm366_vm0, %v1030_v0  ;;  %715 = vmatprep.mubr.msk.bf16.mxu0 %vm1031_vm1, %v1030_v0  ;;  %v378_v2 = vsel %vm366_vm0, %v370_v1, 0  ;;  %v368_v3 = vld [vmem:[%s290_s30] sm:$0xf]  ;;  %vm363_vm2 = vcmask 7168   ;;  %vm421_vm3 = vcmask 64512  }
  0x96   : > { %719 = vmatprep.subr.bf16.mxu1 %v1030_v0  ;;  %721 = vmatprep.mubr.msk.bf16.mxu1 %vm1031_vm1, %v1030_v0  ;;  %v369_v4 = vmul.bf16 1043676725, %v368_v3  ;;  %v1032_v5 = vmov -1e+30   ;;  %365 = vst.msk [vmem:[#allocation3] sm:$0xff] %vm363_vm2, %v1030_v0  ;;  %v1033_v14 = vmov 0  }
  0x97   : > { %714 = vmatpush3.bf16.xpose.msra.mxu0 %v378_v2  ;;  %364 = vst.msk [vmem:[#allocation2] sm:$0xff] %vm363_vm2, %v1032_v5  ;;  %v371_v6 = vld [vmem:[%s317_s12] sm:$0xf]  ;;  %806 = vset.pattern.permute.xlu0 %v1033_v14  ;;  %v453_v19 = vld [vmem:[%s308_s13] sm:$0xf]  ;;  %vm457_vm4 = vcmask 1043456  }
  0x98   : > { %v372_v7 = vunpack.c.l.bf16 %v371_v6  ;;  %807 = vset.pattern.permute.xlu1 %v1033_v14  ;;  %v459_v20 = vsel %vm457_vm4, %v453_v19, 0  ;;  %s702_s21 = sshll.u32 %s1276_s25, 3  ;;  %s706_s27 = sshll.u32 %s1016_s18, 7 }
  0x99   : > { %720 = vmatpush3.bf16.msra.mxu1 %v459_v20  ;;  %s356_s14 = scalar_lea.vmem [#allocation13], %s702_s21  ;;  %s1318_s29 = scalar_lea.hbm %s1371_s4, %s706_s27 }
  0x9a   : > { %s532_s1 = sshll.u32 %s356_s14, 4  ;;  %s518_s7 = scalar_lea.sflag [#allocation7], %s1276_s25  ;;  %s1320_s1 = int_to_ptr.vmem [resolvable:$true] %s532_s1 }
  0x9b   : > { %s934_s5 = scalar_lea.vmem %s1320_s1, 128  ;;  %p1400_p8 = scmp.ne.s32.totalorder %s1386_s28, 0 }
  0x9c   : > { %v445_v35 = vld [vmem:[#allocation4] sm:$0xff]  ;;  %p935_p6 = scmp.ne.s32.totalorder %s1320_s1, %s934_s5  ;;  %s1034_s18 = smov [#allocation13]  }
  0x9d   : > { %v437_v29 = vld [vmem:[#allocation3] sm:$0xff]  ;;  %s938_s6 = sshll.u32 %s1034_s18, 4  ;;  %s939_s6 = int_to_ptr.vmem [resolvable:$false] %s938_s6 }
  0x9e   : > { %716 = vmatmul.mubr.msk.bf16.vlgmr.msra.gmra.mrb[0].mxu0 %vm366_vm0, %v369_v4  ;;  %v420_v15 = vld [vmem:[#allocation2] sm:$0xff]  ;;  %p936_p9 = pnand %p935_p6, %p1400_p8  ;;  %s940_s9 = scalar_lea.vmem %s939_s6, 256 }
  0x9f   : > { %p941_p12 = scmp.lt.s32.totalorder %s1320_s1, %s939_s6  ;;  %p942_p11 = scmp.lt.s32.totalorder %s940_s9, %s934_s5 }
  0xa0   : > { %p937_p10 = pneg %p936_p9 }
  0xa1   : > { %p943_p5 = por %p942_p11, %p941_p12 }
  0xa3   : > { %p944_p4 = pnand %p943_p5, %p937_p10 }
 0x171   : > { %v414_v8 = vpop.f32.mrb[0].mxu0 }
 0x172   : > { %v415_v9 = vadd.f32 %v414_v8, %v372_v7  ;;  %v717_v10 = vpop.f32.mrb[1].mxu0 }
 0x173   : > { %v417_v11 = vpop.f32.mrb[2].mxu0 }
 0x174   : > { %v718_v12 = vpop.f32.mrb[3].mxu0  ;;  %v422_v13 = vsel %vm421_vm3, %v415_v9, -inf }
 0x175   : > { %423 = vmax.xlane.f32.xlu0 %v422_v13 }
 0x202   : > { %v424_v16 = vpop.xlane.xlu0 %423 }
 0x203   : > { %v425_v17 = vmax.f32 %v420_v15, %v424_v16 }
 0x205   : > { %v426_v18 = vsub.f32 %v420_v15, %v425_v17  ;;  %503 = vst.msk [vmem:[#allocation2] sm:$0xff] %vm363_vm2, %v425_v17  ;;  %431 = vperm.xlu0 %806, %v425_v17  }
 0x207   : > { %v427_v27 = vmul.f32 1.442695, %v426_v18 }
 0x284   : > { %v432_v21 = vpop.permute.xlu0 %431 }
 0x285   : > { %v434_v22 = vsub.f32 %v415_v9, %v432_v21 }
 0x287   : > { %v435_v23 = vmul.f32 1.442695, %v434_v22 }
 0x289   : > { %808 = vpow2.f32 %v435_v23 }
 0x28a   : > { %810 = vpow2.f32 %v427_v27 }
 0x293   : > { %v809_v24 = vpop.eup %808 }
 0x294   : > { %v439_v25 = vsel %vm421_vm3, %v809_v24, 0.0  ;;  %v452_v26 = vpack.c.bf16 %v809_v24, %v809_v24  ;;  %v811_v28 = vpop.eup %810 }
 0x295   : > { %440 = vadd.xlane.f32.xlu1 %v439_v25  ;;  %v438_v30 = vmul.f32 %v811_v28, %v437_v29 }
 0x296   : > { %722 = vmatmul.mubr.msk.bf16.vlgmr.msra.gmra.mrb[0].mxu1 %vm421_vm3, %v452_v26 }
 0x2a6   : > { %448 = vperm.xlu1 %807, %v811_v28  }
 0x322   : > { %v441_v31 = vpop.xlane.xlu1 %440 }
 0x323   : > { %v442_v32 = vadd.f32 %v441_v31, %v438_v30 }
 0x325   : > { %444 = vst.msk [vmem:[#allocation3] sm:$0xff] %vm363_vm2, %v442_v32 }
 0x326   : > { %v449_v36 = vpop.permute.xlu1 %448 }
 0x327   : > { %v451_v37 = vmul.f32 %v449_v36, %v445_v35 }
 0x32c   : > { %v507_v33 = vld [vmem:[#allocation3] sm:$0xff] }
 0x32d   : > { %812 = vrcp.f32 %v507_v33 }
 0x337   : > { %v813_v34 = vpop.eup %812 }
 0x338   : > { %512 = vperm.xlu1 %807, %v813_v34  }
 0x369   : > { %v495_v38 = vpop.f32.mrb[0].mxu1 }
 0x36a   : > { %v501_v39 = vadd.f32 %v495_v38, %v451_v37  ;;  %v723_v40 = vpop.f32.mrb[1].mxu1 }
 0x36b   : > { %v498_v41 = vpop.f32.mrb[2].mxu1 }
 0x36c   : > { %502 = vst.msk [vmem:[#allocation4] sm:$0xff] %vm366_vm0, %v501_v39  ;;  %v724_v42 = vpop.f32.mrb[3].mxu1 }
 0x373   : > { %v509_v43 = vld [vmem:[#allocation4] sm:$0xff] }
 0x3b7   : > { %v513_v44 = vpop.permute.xlu1 %512 }
 0x3b8   : > { %v515_v45 = vmul.f32 %v513_v44, %v509_v43 }
 0x3ba   : > { %516 = vst.msk [vmem:[%s356_s14] sm:$0xff] %vm366_vm0, %v515_v45 }
 0x3bb   : > { %947 = shalt.err (!%p944_p4)
}
 0x3bc   : > { %s948_s10 = scalar_lea.hbm %s1318_s29, 128  ;;  %s952_s19 = scalar_lea.hbm %s1371_s4, 1024 }
 0x3bd   : > { %p949_p13 = scmp.ne.s32.totalorder %s1318_s29, %s948_s10  ;;  %p953_p1 = scmp.lt.u32.totalorder %s1318_s29, %s1371_s4 }
 0x3be   : > { %p954_p7 = scmp.lt.u32.totalorder %s952_s19, %s948_s10  ;;  %p956_p6 = scmp.lt.u32.totalorder %s948_s10, %s1318_s29 }
 0x3bf   : > { %p950_p2 = pnand %p949_p13, %p1400_p8 }
 0x3c0   : > { %p955_p3 = por %p954_p7, %p953_p1 }
 0x3c1   : > { %p951_p0 = pneg %p950_p2 }
 0x3c2   : > { %p957_p9 = por %p956_p6, %p955_p3 }
 0x3c4   : > { %p958_p10 = pnand %p957_p9, %p951_p0 }
 0x3c6   : > { %961 = shalt.err (!%p958_p10)
}
 0x3c7   : > { %733 = dma.vmem_to_hbm [thread:$0]  (%p1400_p8), %s1320_s1, 128, %s1318_s29, %s518_s7  }
 0x3c8 PF: > { %s1401_s24 = sld [smem:[#allocation22_spill]]  ;;  %p753_p12 = scmp.ge.s32.totalorder %s1024_s20, 2 }
 0x3c9   : > { %s544_s11 = sand.u32 1, %s1004_s15  }
 0x3ca   : > { %s545_s13 = scalar_lea.sflag [#allocation7], %s544_s11 }
 0x3ce   : > { %p1402_p11 = scmp.ne.s32.totalorder %s1401_s24, 0 }
 0x3d0   : > { %p749_p5 = pnand %p753_p12, %p1402_p11 }
 0x3d2   : > { %999 = dma.done.wait (!%p749_p5), %s545_s13, 128  }
 0x3d3   : > { %1001 = vsyncadd (!%p749_p5), %s545_s13, 4294967168  ;;  %s26_s20 = sadd.s32 1, %s1024_s20   ;;  %s1403_s26 = sld [smem:[#allocation18_spill]] }
 0x3d4   : > { %p23_p4 = scmp.ge.s32.totalorder %s26_s20, 10   ;;  %s1404_s17 = sld [smem:[#allocation21_spill]] }
 0x3d5   : > { %s1405_s18 = sld [smem:[#allocation19_spill]]  ;;  %s1406_s19 = sld [smem:[#allocation20_spill]] }
 0x3d6   : > { %s1407_s15 = smov %s1008_s16  ;;  %25 = sbr.rel (!%p23_p4) target bundleno = 12 (0xc), region = 126 }
 0x3d9   : > { %s1408_s16 = smov %s1403_s26 }
 0x3dd   :  { %550 = vsyncpa [#allocation6], 1 }
 0x3de   :  { %552 = vsyncpa [#allocation6 + $0x1], 1 }
 0x3df   :  { %553 = vsyncpa [#allocation9], 1 }
 0x3e0   :  { %555 = vsyncpa [#allocation9 + $0x1], 1 }
 0x3e1   :  { %556 = vsyncpa [#allocation12], 1 }
 0x3e2   :  { %558 = vsyncpa [#allocation12 + $0x1], 1 }
 0x3e3   :  { %559 = vsyncpa [#allocation7], 1 }
 0x3e4   :  { %561 = vsyncpa [#allocation7 + $0x1], 1 }

</bundles_post_ra>
